<compile_context>
chip_gen: v7x
topology: tpu7x:2x2x1
jax: 0.10.0
libtpu: 0.0.40
codegen_flags: <defaults>
</compile_context>

<pallas_src>
import jax
import jax.numpy as jnp
from jax.experimental import pallas as pl
from jax.experimental.pallas import tpu as pltpu

# ----------------------------- model dims (small) ---------------------------
BATCH = 2
SEQ = 8
INPUT_SIZE = 16
HIDDEN = 32          # scaled-down hidden; 2H = 64 (matmul LHS), 8H = 256 (gates)
NUM_LAYERS = 2       # hard-wired to 2 (matches the module default)


# ------------------------------- Pallas kernel ------------------------------
def lstm_fc_kernel(
    x_ref,       # (T*B, I)   time-major, flattened: row t*B + b
    wih0_ref,    # (I, 8H)    layer-0 input weights in interleaved gate cols
    wbig_ref,    # (2H, 8H)   [[whh0 | wih1], [0 | whh1]] interleaved gate cols
    bbig_ref,    # (1, 8H)    per-gate biases for both layers, interleaved
    fcw_ref,     # (1, H)     fc.weight
    fcb_ref,     # (1, 1)     fc.bias
    out_ref,     # (B, 1)
):
    TB = x_ref.shape[0]
    H2 = wbig_ref.shape[0]
    H = H2 // 2
    B = out_ref.shape[0]
    T = TB // B
    H6 = 6 * H

    w_big = wbig_ref[...]          # (2H, 8H)
    b_big = bbig_ref[...]          # (1, 8H)

    # --- hoisted layer-0 input projection (+ all biases): ONE matmul for the
    # whole sequence. Layer-1 columns of wih0 are zero, so those columns of
    # xp_all simply hold the broadcast layer-1 biases.
    xp_all = (
        jnp.dot(x_ref[...], wih0_ref[...], preferred_element_type=jnp.float32)
        + b_big
    )  # (T*B, 8H)

    # mask zeroing the layer-1 half of the carry after the t=0 step
    mask0 = jnp.concatenate(
        [jnp.ones((B, H), jnp.float32), jnp.zeros((B, H), jnp.float32)], axis=1
    )  # (B, 2H)

    def act(gates, c_cat):
        # columns: [i0 i1 | f0 f1 | o0 o1 | g0 g1]
        # -> one sigmoid dispatch (6H) + one tanh dispatch (2H) for BOTH layers
        sig = jax.nn.sigmoid(gates[:, :H6])          # (B, 6H)
        g = jnp.tanh(gates[:, H6:])                  # (B, 2H)
        c_new = sig[:, 2 * H : 4 * H] * c_cat + sig[:, : 2 * H] * g
        h_new = sig[:, 4 * H : H6] * jnp.tanh(c_new)
        return h_new, c_new

    # ---- t = 0: all carries are zero -> skip the matmul and the f*c term;
    # the layer-1 half must stay zero (layer 1 starts one step later).
    g0 = xp_all[0:B, :]
    sig = jax.nn.sigmoid(g0[:, :H6])
    gg = jnp.tanh(g0[:, H6:])
    c_cat = (sig[:, : 2 * H] * gg) * mask0           # (B, 2H), layer-1 half = 0
    h_cat = sig[:, 4 * H : H6] * jnp.tanh(c_cat)     # layer-1 half -> tanh(0)*o = 0

    # ---- wavefront iterations t = 1..T: one merged matmul feeds both layers.
    # Fully unrolled (T small & static).
    for t in range(1, T + 1):
        fused = jnp.dot(h_cat, w_big, preferred_element_type=jnp.float32)  # (B, 8H)
        add = xp_all[t * B : (t + 1) * B, :] if t < T else b_big
        h_cat, c_cat = act(fused + add, c_cat)

    # fc(lstm_out[:, -1, :]): VPU multiply + cross-lane reduce (no N=1 matmul)
    h1 = h_cat[:, H:]                                 # layer-1 hidden at last step
    out_ref[...] = (
        jnp.sum(h1 * fcw_ref[...], axis=-1, keepdims=True) + fcb_ref[...]
    )


# ------------------------------- wrapper -------------------------------------
def lstm_model_forward(x, params):
    B, T, I = x.shape
    # time-major + flatten so the kernel's per-step access is a static row slice
    # of a lane-dense (.., 8H = 256) projection.
    x_tb = jnp.transpose(x, (1, 0, 2)).reshape(T * B, I)

    vmem = pl.BlockSpec(memory_space=pltpu.MemorySpace.VMEM)
    return pl.pallas_call(
        lstm_fc_kernel,
        out_shape=jax.ShapeDtypeStruct((B, 1), jnp.float32),
        in_specs=[vmem] * 6,
        out_specs=vmem,
    )(
        x_tb,
        params["wih0_big"],
        params["w_big"],
        params["b_big"],
        params["fcw"],
        params["fcb"],
    )


# -------------------- deterministic parameter construction -------------------
def init_params(key, input_size, hidden):
    """Returns (kernel_params, raw_pytorch_layout_params)."""
    k = 1.0 / jnp.sqrt(jnp.float32(hidden))
    keys = jax.random.split(key, 10)
    u = lambda kk, shape: jax.random.uniform(kk, shape, jnp.float32, -k, k)

    raw = {
        "w_ih_l0": u(keys[0], (4 * hidden, input_size)),
        "w_hh_l0": u(keys[1], (4 * hidden, hidden)),
        "b_ih_l0": u(keys[2], (4 * hidden,)),
        "b_hh_l0": u(keys[3], (4 * hidden,)),
        "w_ih_l1": u(keys[4], (4 * hidden, hidden)),
        "w_hh_l1": u(keys[5], (4 * hidden, hidden)),
        "b_ih_l1": u(keys[6], (4 * hidden,)),
        "b_hh_l1": u(keys[7], (4 * hidden,)),
        "fc_w": jax.random.uniform(keys[8], (1, hidden), jnp.float32, -k, k),
        "fc_b": jax.random.uniform(keys[9], (1,), jnp.float32, -k, k),
    }

    H = hidden

    def gates_of(w_t):
        # PyTorch column order (i, f, g, o) -> return (i, f, o, g) blocks
        return w_t[:, :H], w_t[:, H:2 * H], w_t[:, 3 * H:], w_t[:, 2 * H:3 * H]

    i0x, f0x, o0x, g0x = gates_of(raw["w_ih_l0"].T)   # (I, H) each, multiply x_t
    i0h, f0h, o0h, g0h = gates_of(raw["w_hh_l0"].T)   # (H, H) each, multiply h0
    i1x, f1x, o1x, g1x = gates_of(raw["w_ih_l1"].T)   # (H, H) each, multiply h0
    i1h, f1h, o1h, g1h = gates_of(raw["w_hh_l1"].T)   # (H, H) each, multiply h1

    zI = jnp.zeros((input_size, H), jnp.float32)
    zH = jnp.zeros((H, H), jnp.float32)

    # interleaved gate-column layout: (i0, i1, f0, f1, o0, o1, g0, g1)
    wih0_big = jnp.concatenate(
        [i0x, zI, f0x, zI, o0x, zI, g0x, zI], axis=1
    )  # (I, 8H)
    w_big = jnp.concatenate(
        [
            jnp.concatenate([i0h, i1x, f0h, f1x, o0h, o1x, g0h, g1x], axis=1),
            jnp.concatenate([zH, i1h, zH, f1h, zH, o1h, zH, g1h], axis=1),
        ],
        axis=0,
    )  # (2H, 8H): top rows multiply h0, bottom rows multiply h1

    b0 = raw["b_ih_l0"] + raw["b_hh_l0"]
    b1 = raw["b_ih_l1"] + raw["b_hh_l1"]
    bi0, bf0, bo0, bg0 = b0[:H], b0[H:2 * H], b0[3 * H:], b0[2 * H:3 * H]
    bi1, bf1, bo1, bg1 = b1[:H], b1[H:2 * H], b1[3 * H:], b1[2 * H:3 * H]
    b_big = jnp.concatenate([bi0, bi1, bf0, bf1, bo0, bo1, bg0, bg1])[None, :]

    params = {
        "wih0_big": wih0_big,
        "w_big": w_big,
        "b_big": b_big,                # (1, 8H)
        "fcw": raw["fc_w"],            # (1, H)
        "fcb": raw["fc_b"][None, :],   # (1, 1)
    }
    return params, raw


# ------------------------------ pure-JAX reference ---------------------------
def reference_forward(x, raw):
    """Straight PyTorch-semantics LSTM (gate order i, f, g, o) + Linear."""
    B, T, _ = x.shape
    H = raw["w_hh_l0"].shape[1]

    def cell(x_t, h, c, w_ih, w_hh, b_ih, b_hh):
        g = x_t @ w_ih.T + h @ w_hh.T + b_ih + b_hh
        i = jax.nn.sigmoid(g[:, :H])
        f = jax.nn.sigmoid(g[:, H:2 * H])
        gg = jnp.tanh(g[:, 2 * H:3 * H])
        o = jax.nn.sigmoid(g[:, 3 * H:])
        c = f * c + i * gg
        return o * jnp.tanh(c), c

    h0 = c0 = h1 = c1 = jnp.zeros((B, H), jnp.float32)
    for t in range(T):
        h0, c0 = cell(x[:, t, :], h0, c0,
                      raw["w_ih_l0"], raw["w_hh_l0"], raw["b_ih_l0"], raw["b_hh_l0"])
        h1, c1 = cell(h0, h1, c1,
                      raw["w_ih_l1"], raw["w_hh_l1"], raw["b_ih_l1"], raw["b_hh_l1"])
    return h1 @ raw["fc_w"].T + raw["fc_b"]


if __name__ == "__main__":
    key = jax.random.PRNGKey(0)
    kx, kp = jax.random.split(key)
    x = jax.random.normal(kx, (BATCH, SEQ, INPUT_SIZE), jnp.float32)
    params, raw = init_params(kp, INPUT_SIZE, HIDDEN)

    out = jax.block_until_ready(lstm_model_forward(x, params))
    ref = reference_forward(x, raw)

    assert out.shape == (BATCH, 1)
    assert jnp.allclose(out, ref, atol=1e-4, rtol=1e-4), (out, ref)

    print("KERNEL_OK")
</pallas_src>

<mosaic_0001>
module attributes {stable_mosaic.version = 11 : i64} {
  func.func @lstm_fc_kernel(%arg0: memref<16x16xf32, #tpu.memory_space<vmem>>, %arg1: memref<16x256xf32, #tpu.memory_space<vmem>>, %arg2: memref<64x256xf32, #tpu.memory_space<vmem>>, %arg3: memref<1x256xf32, #tpu.memory_space<vmem>>, %arg4: memref<1x32xf32, #tpu.memory_space<vmem>>, %arg5: memref<1x1xf32, #tpu.memory_space<vmem>>, %arg6: memref<2x1xf32, #tpu.memory_space<vmem>>) attributes {dimension_semantics = [], scalar_prefetch = 0 : i64, scratch_operands = 0 : i64, tpu.core_type = #tpu.core_type<tc>} {
    %c0 = arith.constant 0 : index
    %c0_0 = arith.constant 0 : index
    %0 = vector.load %arg2[%c0, %c0_0] : memref<64x256xf32, #tpu.memory_space<vmem>>, vector<64x256xf32>
    %c0_1 = arith.constant 0 : index
    %c0_2 = arith.constant 0 : index
    %1 = vector.load %arg3[%c0_1, %c0_2] : memref<1x256xf32, #tpu.memory_space<vmem>>, vector<1x256xf32>
    %c0_3 = arith.constant 0 : index
    %c0_4 = arith.constant 0 : index
    %2 = vector.load %arg0[%c0_3, %c0_4] : memref<16x16xf32, #tpu.memory_space<vmem>>, vector<16x16xf32>
    %c0_5 = arith.constant 0 : index
    %c0_6 = arith.constant 0 : index
    %3 = vector.load %arg1[%c0_5, %c0_6] : memref<16x256xf32, #tpu.memory_space<vmem>>, vector<16x256xf32>
    %cst = arith.constant dense<0.000000e+00> : vector<16x256xf32>
    %4 = tpu.matmul %2, %3, %cst {dimension_numbers = #tpu.dot_dimension_numbers<[1], [0], [0], [1], [0, 0, 1, 1], [], []>} : vector<16x16xf32>, vector<16x256xf32>, vector<16x256xf32> -> vector<16x256xf32>
    %5 = vector.broadcast %1 : vector<1x256xf32> to vector<16x256xf32>
    %6 = arith.addf %4, %5 : vector<16x256xf32>
    %cst_7 = arith.constant 1.000000e+00 : f32
    %7 = vector.broadcast %cst_7 : f32 to vector<2x32xf32>
    %cst_8 = arith.constant 0.000000e+00 : f32
    %8 = vector.broadcast %cst_8 : f32 to vector<2x32xf32>
    %9 = tpu.concatenate %7, %8 in 1 : vector<2x32xf32>, vector<2x32xf32> -> vector<2x64xf32>
    %10 = vector.extract_strided_slice %6 {offsets = [0, 0], sizes = [2, 256], strides = [1, 1]} : vector<16x256xf32> to vector<2x256xf32>
    %11 = vector.extract_strided_slice %10 {offsets = [0, 0], sizes = [2, 192], strides = [1, 1]} : vector<2x256xf32> to vector<2x192xf32>
    %12 = arith.negf %11 : vector<2x192xf32>
    %13 = math.exp %12 : vector<2x192xf32>
    %cst_9 = arith.constant 1.000000e+00 : f32
    %14 = vector.broadcast %cst_9 : f32 to vector<2x192xf32>
    %15 = arith.addf %14, %13 : vector<2x192xf32>
    %16 = arith.divf %14, %15 : vector<2x192xf32>
    %17 = vector.extract_strided_slice %10 {offsets = [0, 192], sizes = [2, 64], strides = [1, 1]} : vector<2x256xf32> to vector<2x64xf32>
    %18 = math.tanh %17 : vector<2x64xf32>
    %19 = vector.extract_strided_slice %16 {offsets = [0, 0], sizes = [2, 64], strides = [1, 1]} : vector<2x192xf32> to vector<2x64xf32>
    %20 = arith.mulf %19, %18 : vector<2x64xf32>
    %21 = arith.mulf %20, %9 : vector<2x64xf32>
    %22 = vector.extract_strided_slice %16 {offsets = [0, 128], sizes = [2, 64], strides = [1, 1]} : vector<2x192xf32> to vector<2x64xf32>
    %23 = math.tanh %21 : vector<2x64xf32>
    %24 = arith.mulf %22, %23 : vector<2x64xf32>
    %cst_10 = arith.constant dense<0.000000e+00> : vector<2x256xf32>
    %25 = tpu.matmul %24, %0, %cst_10 {dimension_numbers = #tpu.dot_dimension_numbers<[1], [0], [0], [1], [0, 0, 1, 1], [], []>} : vector<2x64xf32>, vector<64x256xf32>, vector<2x256xf32> -> vector<2x256xf32>
    %26 = vector.extract_strided_slice %6 {offsets = [2, 0], sizes = [2, 256], strides = [1, 1]} : vector<16x256xf32> to vector<2x256xf32>
    %27 = arith.addf %25, %26 : vector<2x256xf32>
    %28 = vector.extract_strided_slice %27 {offsets = [0, 0], sizes = [2, 192], strides = [1, 1]} : vector<2x256xf32> to vector<2x192xf32>
    %29 = arith.negf %28 : vector<2x192xf32>
    %30 = math.exp %29 : vector<2x192xf32>
    %cst_11 = arith.constant 1.000000e+00 : f32
    %31 = vector.broadcast %cst_11 : f32 to vector<2x192xf32>
    %32 = arith.addf %31, %30 : vector<2x192xf32>
    %33 = arith.divf %31, %32 : vector<2x192xf32>
    %34 = vector.extract_strided_slice %27 {offsets = [0, 192], sizes = [2, 64], strides = [1, 1]} : vector<2x256xf32> to vector<2x64xf32>
    %35 = math.tanh %34 : vector<2x64xf32>
    %36 = vector.extract_strided_slice %33 {offsets = [0, 64], sizes = [2, 64], strides = [1, 1]} : vector<2x192xf32> to vector<2x64xf32>
    %37 = arith.mulf %36, %21 : vector<2x64xf32>
    %38 = vector.extract_strided_slice %33 {offsets = [0, 0], sizes = [2, 64], strides = [1, 1]} : vector<2x192xf32> to vector<2x64xf32>
    %39 = arith.mulf %38, %35 : vector<2x64xf32>
    %40 = arith.addf %37, %39 : vector<2x64xf32>
    %41 = vector.extract_strided_slice %33 {offsets = [0, 128], sizes = [2, 64], strides = [1, 1]} : vector<2x192xf32> to vector<2x64xf32>
    %42 = math.tanh %40 : vector<2x64xf32>
    %43 = arith.mulf %41, %42 : vector<2x64xf32>
    %cst_12 = arith.constant dense<0.000000e+00> : vector<2x256xf32>
    %44 = tpu.matmul %43, %0, %cst_12 {dimension_numbers = #tpu.dot_dimension_numbers<[1], [0], [0], [1], [0, 0, 1, 1], [], []>} : vector<2x64xf32>, vector<64x256xf32>, vector<2x256xf32> -> vector<2x256xf32>
    %45 = vector.extract_strided_slice %6 {offsets = [4, 0], sizes = [2, 256], strides = [1, 1]} : vector<16x256xf32> to vector<2x256xf32>
    %46 = arith.addf %44, %45 : vector<2x256xf32>
    %47 = vector.extract_strided_slice %46 {offsets = [0, 0], sizes = [2, 192], strides = [1, 1]} : vector<2x256xf32> to vector<2x192xf32>
    %48 = arith.negf %47 : vector<2x192xf32>
    %49 = math.exp %48 : vector<2x192xf32>
    %cst_13 = arith.constant 1.000000e+00 : f32
    %50 = vector.broadcast %cst_13 : f32 to vector<2x192xf32>
    %51 = arith.addf %50, %49 : vector<2x192xf32>
    %52 = arith.divf %50, %51 : vector<2x192xf32>
    %53 = vector.extract_strided_slice %46 {offsets = [0, 192], sizes = [2, 64], strides = [1, 1]} : vector<2x256xf32> to vector<2x64xf32>
    %54 = math.tanh %53 : vector<2x64xf32>
    %55 = vector.extract_strided_slice %52 {offsets = [0, 64], sizes = [2, 64], strides = [1, 1]} : vector<2x192xf32> to vector<2x64xf32>
    %56 = arith.mulf %55, %40 : vector<2x64xf32>
    %57 = vector.extract_strided_slice %52 {offsets = [0, 0], sizes = [2, 64], strides = [1, 1]} : vector<2x192xf32> to vector<2x64xf32>
    %58 = arith.mulf %57, %54 : vector<2x64xf32>
    %59 = arith.addf %56, %58 : vector<2x64xf32>
    %60 = vector.extract_strided_slice %52 {offsets = [0, 128], sizes = [2, 64], strides = [1, 1]} : vector<2x192xf32> to vector<2x64xf32>
    %61 = math.tanh %59 : vector<2x64xf32>
    %62 = arith.mulf %60, %61 : vector<2x64xf32>
    %cst_14 = arith.constant dense<0.000000e+00> : vector<2x256xf32>
    %63 = tpu.matmul %62, %0, %cst_14 {dimension_numbers = #tpu.dot_dimension_numbers<[1], [0], [0], [1], [0, 0, 1, 1], [], []>} : vector<2x64xf32>, vector<64x256xf32>, vector<2x256xf32> -> vector<2x256xf32>
    %64 = vector.extract_strided_slice %6 {offsets = [6, 0], sizes = [2, 256], strides = [1, 1]} : vector<16x256xf32> to vector<2x256xf32>
    %65 = arith.addf %63, %64 : vector<2x256xf32>
    %66 = vector.extract_strided_slice %65 {offsets = [0, 0], sizes = [2, 192], strides = [1, 1]} : vector<2x256xf32> to vector<2x192xf32>
    %67 = arith.negf %66 : vector<2x192xf32>
    %68 = math.exp %67 : vector<2x192xf32>
    %cst_15 = arith.constant 1.000000e+00 : f32
    %69 = vector.broadcast %cst_15 : f32 to vector<2x192xf32>
    %70 = arith.addf %69, %68 : vector<2x192xf32>
    %71 = arith.divf %69, %70 : vector<2x192xf32>
    %72 = vector.extract_strided_slice %65 {offsets = [0, 192], sizes = [2, 64], strides = [1, 1]} : vector<2x256xf32> to vector<2x64xf32>
    %73 = math.tanh %72 : vector<2x64xf32>
    %74 = vector.extract_strided_slice %71 {offsets = [0, 64], sizes = [2, 64], strides = [1, 1]} : vector<2x192xf32> to vector<2x64xf32>
    %75 = arith.mulf %74, %59 : vector<2x64xf32>
    %76 = vector.extract_strided_slice %71 {offsets = [0, 0], sizes = [2, 64], strides = [1, 1]} : vector<2x192xf32> to vector<2x64xf32>
    %77 = arith.mulf %76, %73 : vector<2x64xf32>
    %78 = arith.addf %75, %77 : vector<2x64xf32>
    %79 = vector.extract_strided_slice %71 {offsets = [0, 128], sizes = [2, 64], strides = [1, 1]} : vector<2x192xf32> to vector<2x64xf32>
    %80 = math.tanh %78 : vector<2x64xf32>
    %81 = arith.mulf %79, %80 : vector<2x64xf32>
    %cst_16 = arith.constant dense<0.000000e+00> : vector<2x256xf32>
    %82 = tpu.matmul %81, %0, %cst_16 {dimension_numbers = #tpu.dot_dimension_numbers<[1], [0], [0], [1], [0, 0, 1, 1], [], []>} : vector<2x64xf32>, vector<64x256xf32>, vector<2x256xf32> -> vector<2x256xf32>
    %83 = vector.extract_strided_slice %6 {offsets = [8, 0], sizes = [2, 256], strides = [1, 1]} : vector<16x256xf32> to vector<2x256xf32>
    %84 = arith.addf %82, %83 : vector<2x256xf32>
    %85 = vector.extract_strided_slice %84 {offsets = [0, 0], sizes = [2, 192], strides = [1, 1]} : vector<2x256xf32> to vector<2x192xf32>
    %86 = arith.negf %85 : vector<2x192xf32>
    %87 = math.exp %86 : vector<2x192xf32>
    %cst_17 = arith.constant 1.000000e+00 : f32
    %88 = vector.broadcast %cst_17 : f32 to vector<2x192xf32>
    %89 = arith.addf %88, %87 : vector<2x192xf32>
    %90 = arith.divf %88, %89 : vector<2x192xf32>
    %91 = vector.extract_strided_slice %84 {offsets = [0, 192], sizes = [2, 64], strides = [1, 1]} : vector<2x256xf32> to vector<2x64xf32>
    %92 = math.tanh %91 : vector<2x64xf32>
    %93 = vector.extract_strided_slice %90 {offsets = [0, 64], sizes = [2, 64], strides = [1, 1]} : vector<2x192xf32> to vector<2x64xf32>
    %94 = arith.mulf %93, %78 : vector<2x64xf32>
    %95 = vector.extract_strided_slice %90 {offsets = [0, 0], sizes = [2, 64], strides = [1, 1]} : vector<2x192xf32> to vector<2x64xf32>
    %96 = arith.mulf %95, %92 : vector<2x64xf32>
    %97 = arith.addf %94, %96 : vector<2x64xf32>
    %98 = vector.extract_strided_slice %90 {offsets = [0, 128], sizes = [2, 64], strides = [1, 1]} : vector<2x192xf32> to vector<2x64xf32>
    %99 = math.tanh %97 : vector<2x64xf32>
    %100 = arith.mulf %98, %99 : vector<2x64xf32>
    %cst_18 = arith.constant dense<0.000000e+00> : vector<2x256xf32>
    %101 = tpu.matmul %100, %0, %cst_18 {dimension_numbers = #tpu.dot_dimension_numbers<[1], [0], [0], [1], [0, 0, 1, 1], [], []>} : vector<2x64xf32>, vector<64x256xf32>, vector<2x256xf32> -> vector<2x256xf32>
    %102 = vector.extract_strided_slice %6 {offsets = [10, 0], sizes = [2, 256], strides = [1, 1]} : vector<16x256xf32> to vector<2x256xf32>
    %103 = arith.addf %101, %102 : vector<2x256xf32>
    %104 = vector.extract_strided_slice %103 {offsets = [0, 0], sizes = [2, 192], strides = [1, 1]} : vector<2x256xf32> to vector<2x192xf32>
    %105 = arith.negf %104 : vector<2x192xf32>
    %106 = math.exp %105 : vector<2x192xf32>
    %cst_19 = arith.constant 1.000000e+00 : f32
    %107 = vector.broadcast %cst_19 : f32 to vector<2x192xf32>
    %108 = arith.addf %107, %106 : vector<2x192xf32>
    %109 = arith.divf %107, %108 : vector<2x192xf32>
    %110 = vector.extract_strided_slice %103 {offsets = [0, 192], sizes = [2, 64], strides = [1, 1]} : vector<2x256xf32> to vector<2x64xf32>
    %111 = math.tanh %110 : vector<2x64xf32>
    %112 = vector.extract_strided_slice %109 {offsets = [0, 64], sizes = [2, 64], strides = [1, 1]} : vector<2x192xf32> to vector<2x64xf32>
    %113 = arith.mulf %112, %97 : vector<2x64xf32>
    %114 = vector.extract_strided_slice %109 {offsets = [0, 0], sizes = [2, 64], strides = [1, 1]} : vector<2x192xf32> to vector<2x64xf32>
    %115 = arith.mulf %114, %111 : vector<2x64xf32>
    %116 = arith.addf %113, %115 : vector<2x64xf32>
    %117 = vector.extract_strided_slice %109 {offsets = [0, 128], sizes = [2, 64], strides = [1, 1]} : vector<2x192xf32> to vector<2x64xf32>
    %118 = math.tanh %116 : vector<2x64xf32>
    %119 = arith.mulf %117, %118 : vector<2x64xf32>
    %cst_20 = arith.constant dense<0.000000e+00> : vector<2x256xf32>
    %120 = tpu.matmul %119, %0, %cst_20 {dimension_numbers = #tpu.dot_dimension_numbers<[1], [0], [0], [1], [0, 0, 1, 1], [], []>} : vector<2x64xf32>, vector<64x256xf32>, vector<2x256xf32> -> vector<2x256xf32>
    %121 = vector.extract_strided_slice %6 {offsets = [12, 0], sizes = [2, 256], strides = [1, 1]} : vector<16x256xf32> to vector<2x256xf32>
    %122 = arith.addf %120, %121 : vector<2x256xf32>
    %123 = vector.extract_strided_slice %122 {offsets = [0, 0], sizes = [2, 192], strides = [1, 1]} : vector<2x256xf32> to vector<2x192xf32>
    %124 = arith.negf %123 : vector<2x192xf32>
    %125 = math.exp %124 : vector<2x192xf32>
    %cst_21 = arith.constant 1.000000e+00 : f32
    %126 = vector.broadcast %cst_21 : f32 to vector<2x192xf32>
    %127 = arith.addf %126, %125 : vector<2x192xf32>
    %128 = arith.divf %126, %127 : vector<2x192xf32>
    %129 = vector.extract_strided_slice %122 {offsets = [0, 192], sizes = [2, 64], strides = [1, 1]} : vector<2x256xf32> to vector<2x64xf32>
    %130 = math.tanh %129 : vector<2x64xf32>
    %131 = vector.extract_strided_slice %128 {offsets = [0, 64], sizes = [2, 64], strides = [1, 1]} : vector<2x192xf32> to vector<2x64xf32>
    %132 = arith.mulf %131, %116 : vector<2x64xf32>
    %133 = vector.extract_strided_slice %128 {offsets = [0, 0], sizes = [2, 64], strides = [1, 1]} : vector<2x192xf32> to vector<2x64xf32>
    %134 = arith.mulf %133, %130 : vector<2x64xf32>
    %135 = arith.addf %132, %134 : vector<2x64xf32>
    %136 = vector.extract_strided_slice %128 {offsets = [0, 128], sizes = [2, 64], strides = [1, 1]} : vector<2x192xf32> to vector<2x64xf32>
    %137 = math.tanh %135 : vector<2x64xf32>
    %138 = arith.mulf %136, %137 : vector<2x64xf32>
    %cst_22 = arith.constant dense<0.000000e+00> : vector<2x256xf32>
    %139 = tpu.matmul %138, %0, %cst_22 {dimension_numbers = #tpu.dot_dimension_numbers<[1], [0], [0], [1], [0, 0, 1, 1], [], []>} : vector<2x64xf32>, vector<64x256xf32>, vector<2x256xf32> -> vector<2x256xf32>
    %140 = vector.extract_strided_slice %6 {offsets = [14, 0], sizes = [2, 256], strides = [1, 1]} : vector<16x256xf32> to vector<2x256xf32>
    %141 = arith.addf %139, %140 : vector<2x256xf32>
    %142 = vector.extract_strided_slice %141 {offsets = [0, 0], sizes = [2, 192], strides = [1, 1]} : vector<2x256xf32> to vector<2x192xf32>
    %143 = arith.negf %142 : vector<2x192xf32>
    %144 = math.exp %143 : vector<2x192xf32>
    %cst_23 = arith.constant 1.000000e+00 : f32
    %145 = vector.broadcast %cst_23 : f32 to vector<2x192xf32>
    %146 = arith.addf %145, %144 : vector<2x192xf32>
    %147 = arith.divf %145, %146 : vector<2x192xf32>
    %148 = vector.extract_strided_slice %141 {offsets = [0, 192], sizes = [2, 64], strides = [1, 1]} : vector<2x256xf32> to vector<2x64xf32>
    %149 = math.tanh %148 : vector<2x64xf32>
    %150 = vector.extract_strided_slice %147 {offsets = [0, 64], sizes = [2, 64], strides = [1, 1]} : vector<2x192xf32> to vector<2x64xf32>
    %151 = arith.mulf %150, %135 : vector<2x64xf32>
    %152 = vector.extract_strided_slice %147 {offsets = [0, 0], sizes = [2, 64], strides = [1, 1]} : vector<2x192xf32> to vector<2x64xf32>
    %153 = arith.mulf %152, %149 : vector<2x64xf32>
    %154 = arith.addf %151, %153 : vector<2x64xf32>
    %155 = vector.extract_strided_slice %147 {offsets = [0, 128], sizes = [2, 64], strides = [1, 1]} : vector<2x192xf32> to vector<2x64xf32>
    %156 = math.tanh %154 : vector<2x64xf32>
    %157 = arith.mulf %155, %156 : vector<2x64xf32>
    %cst_24 = arith.constant dense<0.000000e+00> : vector<2x256xf32>
    %158 = tpu.matmul %157, %0, %cst_24 {dimension_numbers = #tpu.dot_dimension_numbers<[1], [0], [0], [1], [0, 0, 1, 1], [], []>} : vector<2x64xf32>, vector<64x256xf32>, vector<2x256xf32> -> vector<2x256xf32>
    %159 = vector.broadcast %1 : vector<1x256xf32> to vector<2x256xf32>
    %160 = arith.addf %158, %159 : vector<2x256xf32>
    %161 = vector.extract_strided_slice %160 {offsets = [0, 0], sizes = [2, 192], strides = [1, 1]} : vector<2x256xf32> to vector<2x192xf32>
    %162 = arith.negf %161 : vector<2x192xf32>
    %163 = math.exp %162 : vector<2x192xf32>
    %cst_25 = arith.constant 1.000000e+00 : f32
    %164 = vector.broadcast %cst_25 : f32 to vector<2x192xf32>
    %165 = arith.addf %164, %163 : vector<2x192xf32>
    %166 = arith.divf %164, %165 : vector<2x192xf32>
    %167 = vector.extract_strided_slice %160 {offsets = [0, 192], sizes = [2, 64], strides = [1, 1]} : vector<2x256xf32> to vector<2x64xf32>
    %168 = math.tanh %167 : vector<2x64xf32>
    %169 = vector.extract_strided_slice %166 {offsets = [0, 64], sizes = [2, 64], strides = [1, 1]} : vector<2x192xf32> to vector<2x64xf32>
    %170 = arith.mulf %169, %154 : vector<2x64xf32>
    %171 = vector.extract_strided_slice %166 {offsets = [0, 0], sizes = [2, 64], strides = [1, 1]} : vector<2x192xf32> to vector<2x64xf32>
    %172 = arith.mulf %171, %168 : vector<2x64xf32>
    %173 = arith.addf %170, %172 : vector<2x64xf32>
    %174 = vector.extract_strided_slice %166 {offsets = [0, 128], sizes = [2, 64], strides = [1, 1]} : vector<2x192xf32> to vector<2x64xf32>
    %175 = math.tanh %173 : vector<2x64xf32>
    %176 = arith.mulf %174, %175 : vector<2x64xf32>
    %177 = vector.extract_strided_slice %176 {offsets = [0, 32], sizes = [2, 32], strides = [1, 1]} : vector<2x64xf32> to vector<2x32xf32>
    %c0_26 = arith.constant 0 : index
    %c0_27 = arith.constant 0 : index
    %178 = vector.load %arg4[%c0_26, %c0_27] : memref<1x32xf32, #tpu.memory_space<vmem>>, vector<1x32xf32>
    %179 = vector.broadcast %178 : vector<1x32xf32> to vector<2x32xf32>
    %180 = arith.mulf %177, %179 : vector<2x32xf32>
    %cst_28 = arith.constant dense<0.000000e+00> : vector<2xf32>
    %181 = vector.multi_reduction <add>, %180, %cst_28 [1] : vector<2x32xf32> to vector<2xf32>
    %182 = vector.shape_cast %181 : vector<2xf32> to vector<2x1xf32>
    %c0_29 = arith.constant 0 : index
    %c0_30 = arith.constant 0 : index
    %183 = vector.load %arg5[%c0_29, %c0_30] : memref<1x1xf32, #tpu.memory_space<vmem>>, vector<1x1xf32>
    %184 = vector.broadcast %183 : vector<1x1xf32> to vector<2x1xf32>
    %185 = arith.addf %182, %184 : vector<2x1xf32>
    %c0_31 = arith.constant 0 : index
    %c0_32 = arith.constant 0 : index
    %186 = vector.load %arg6[%c0_31, %c0_32] : memref<2x1xf32, #tpu.memory_space<vmem>>, vector<2x1xf32>
    tpu.vector_store %arg6[%c0_31, %c0_32], %185 {strides = array<i32>} : memref<2x1xf32, #tpu.memory_space<vmem>>, vector<2x1xf32>,
    return
  }
}

</mosaic_0001>

<bundles_post_ra>
// kernel: tpu_custom_call.1
= control target key start
LH: loop header
LB: loop body
LE: loop exit
PB: predicated region body
PF: predicated region fallthrough
CT: control target
= control target key end

     0   :  { %s1725_s0 = inlined_call_operand.hbm [shape: f32[16,16], index: 0, kind: input, shape index: {}]   ;;  %s1726_s1 = inlined_call_operand.hbm [shape: f32[16,256], index: 1, kind: input, shape index: {}]   ;;  %s1727_s2 = inlined_call_operand.hbm [shape: f32[64,256], index: 2, kind: input, shape index: {}]   ;;  %s1728_s3 = inlined_call_operand.vmem [shape: f32[1,256], index: 3, kind: input, shape index: {}]   ;;  %s1729_s4 = inlined_call_operand.vmem [shape: f32[1,32], index: 4, kind: input, shape index: {}]   ;;  %s1730_s5 = inlined_call_operand.<no memory space> [shape: f32[1,1], index: 5, kind: input, shape index: {}]   ;;  %s1731_s6 = inlined_call_operand.vmem [shape: f32[2,1], index: 6, kind: output, shape index: {}]  }
   0x1   :  { %v11_v0 = vstv %s1730_s5 }
   0x2   :  { %12 = vst [vmem:[#allocation2] sm:$0x1] %v11_v0 }
   0x3   :  { %13 = vsyncpa [#allocation4], 0 }
   0x4   :  { %14 = vsyncpa [#allocation6], 0  ;;  %s1457_s23 = smov [#allocation5]   ;;  %s1387_s27 = scalar_lea.hbm %s1726_s1, 512 }
   0x5   :  { %s32_s24 = sshll.u32 %s1457_s23, 4  ;;  %p1388_p0 = scmp.ne.s32.totalorder %s1726_s1, %s1387_s27  ;;  %s33_s24 = int_to_ptr.vmem [resolvable:$true] %s32_s24 }
   0x6   :  { %p1391_p1 = scmp.lt.u32.totalorder %s1387_s27, %s1726_s1 }
   0x8   :  { %p1393_p2 = pnand %p1391_p1, %p1388_p0 }
   0xa   :  { %1396 = shalt.err (!%p1393_p2)
}
   0xb   :  { %s1397_s5 = scalar_lea.vmem %s33_s24, 512  ;;  %p1402_p4 = scmp.lt.s32.totalorder %s33_s24, %s33_s24 }
   0xc   :  { %p1398_p3 = scmp.ne.s32.totalorder %s33_s24, %s1397_s5  ;;  %p1403_p5 = scmp.lt.s32.totalorder %s1397_s5, %s1397_s5 }
   0xe   :  { %p1404_p6 = por %p1403_p5, %p1402_p4 }
  0x10   :  { %p1405_p7 = pnand %p1404_p6, %p1398_p3 }
  0x12   :  { %1408 = shalt.err (!%p1405_p7)
}
  0x13   :  { %s1458_s8 = smov 256   ;;  %s1459_s9 = smov 16  }
  0x14   :  { %38 = dma.hbm_to_vmem [thread:$0]  %s1726_s1, 512, %s33_s24, [#allocation6], %s1458_s8, %s1458_s8, %s1459_s9  }
  0x15   :  { %s1460_s12 = smov [#allocation3]   ;;  %s1409_s16 = scalar_lea.hbm %s1725_s0, 256 }
  0x16   :  { %s20_s13 = sshll.u32 %s1460_s12, 4  ;;  %p1410_p8 = scmp.ne.s32.totalorder %s1725_s0, %s1409_s16  ;;  %s21_s13 = int_to_ptr.vmem [resolvable:$true] %s20_s13 }
  0x17   :  { %p1413_p9 = scmp.lt.u32.totalorder %s1409_s16, %s1725_s0 }
  0x19   :  { %p1415_p10 = pnand %p1413_p9, %p1410_p8 }
  0x1b   :  { %1418 = shalt.err (!%p1415_p10)
}
  0x1c   :  { %s1419_s21 = scalar_lea.vmem %s21_s13, 256  ;;  %p1424_p12 = scmp.lt.s32.totalorder %s21_s13, %s21_s13 }
  0x1d   :  { %p1420_p11 = scmp.ne.s32.totalorder %s21_s13, %s1419_s21  ;;  %p1425_p13 = scmp.lt.s32.totalorder %s1419_s21, %s1419_s21 }
  0x1f   :  { %p1426_p0 = por %p1425_p13, %p1424_p12 }
  0x21   :  { %p1427_p1 = pnand %p1426_p0, %p1420_p11 }
  0x23   :  { %1430 = shalt.err (!%p1427_p1)
}
  0x24   :  { %s1461_s1 = smov 128   ;;  %s1462_s22 = smov 8  }
  0x25   :  { %26 = dma.hbm_to_vmem [thread:$0]  %s1725_s0, 256, %s21_s13, [#allocation4], %s1461_s1, %s1461_s1, %s1462_s22  }
  0x26   :  { %s1463_s25 = smov [#allocation7]   ;;  %s1431_s29 = scalar_lea.hbm %s1727_s2, 2048 }
  0x27   :  { %s44_s26 = sshll.u32 %s1463_s25, 4  ;;  %p1432_p2 = scmp.ne.s32.totalorder %s1727_s2, %s1431_s29  ;;  %s45_s26 = int_to_ptr.vmem [resolvable:$true] %s44_s26 }
  0x28   :  { %p1435_p3 = scmp.lt.u32.totalorder %s1431_s29, %s1727_s2 }
  0x2a   :  { %p1437_p4 = pnand %p1435_p3, %p1432_p2 }
  0x2c   :  { %1440 = shalt.err (!%p1437_p4)
}
  0x2d   :  { %s1441_s11 = scalar_lea.vmem %s45_s26, 2048  ;;  %p1446_p6 = scmp.lt.s32.totalorder %s45_s26, %s45_s26 }
  0x2e   :  { %p1442_p5 = scmp.ne.s32.totalorder %s45_s26, %s1441_s11  ;;  %p1447_p7 = scmp.lt.s32.totalorder %s1441_s11, %s1441_s11 }
  0x30   :  { %p1448_p8 = por %p1447_p7, %p1446_p6 }
  0x32   :  { %p1449_p9 = pnand %p1448_p8, %p1442_p5 }
  0x34   :  { %1452 = shalt.err (!%p1449_p9)
}
  0x35   :  { %50 = dma.hbm_to_vmem [thread:$0]  %s1727_s2, 2048, %s45_s26, [#allocation6], %s1458_s8, %s1458_s8, %s1459_s9  }
  0x36   :  { %1453 = dma.done.wait [#allocation4], 256  }
  0x37   :  { %1454 = vsyncadd [#allocation4], 4294967040 }
  0x38   :  { %1455 = dma.done.wait [#allocation6], 2560  }
  0x39   :  { %1456 = vsyncadd [#allocation6], 4294964736  ;;  %v1464_v1 = vmov 0.0   ;;  %v86_v2 = vld [vmem:[#allocation5 + $0x8] sm:$0xff]  ;;  %v88_v3 = vld [vmem:[#allocation5 + $0x18] sm:$0xff]  ;;  %vm100_vm0 = vcmask 130048   ;;  %v90_v9 = vlaneseq }
  0x3a   :  { %171 = vmatprep.mubr.f32.mxu0 %v1464_v1  ;;  %281 = vmatprep.mubr.f32.mxu1 %v1464_v1  ;;  %v85_v4 = vld [vmem:[#allocation5] sm:$0xff]  ;;  %v1136_v5 = vpack.c.bf16 %v88_v3, %v86_v2  ;;  %v87_v6 = vld [vmem:[#allocation5 + $0x10] sm:$0xff]  ;;  %v67_v15 = vld [vmem:[#allocation7 + $0x8] sm:$0xff]  ;;  %vm184_vm1 = vcmask 261120   ;;  %vm213_vm2 = vcmask 523264   ;;  %s1466_s14 = smov 32  }
  0x3b   :  { %v1138_v7 = vpack.c.bf16 %v87_v6, %v85_v4  ;;  %v83_v8 = vld [vmem:[#allocation3] sm:$0xff]  ;;  %v91_v10 = vshrl.u32 %v90_v9, 7  ;;  %v69_v16 = vld [vmem:[#allocation7 + $0x18] sm:$0xff]  ;;  %v66_v19 = vld [vmem:[#allocation7] sm:$0xff]  ;;  %v185_v53 = vsel %vm184_vm1, 1.0, %v1464_v1  ;;  %vm1086_vm3 = vcmask 254976  }
  0x3c   :  { %1137 = vmatprep.subr.bf16.mxu0 %v1136_v5  ;;  %v82_v12 = vld [vmem:[%s1728_s3] sm:$0x3]  ;;  %v1557_v18 = vpack.c.bf16 %v69_v16, %v67_v15  ;;  %v73_v24 = vld [vmem:[#allocation7 + $0x38] sm:$0xff]  ;;  %v70_v26 = vld [vmem:[#allocation7 + $0x20] sm:$0xff]  ;;  %s1465_s3 = smov 64   ;;  %vm1098_vm4 = vcmask 1024  }
  0x3d   :  { %1139 = vmatpush1.bf16.msra.mxu0 %v1138_v7  ;;  %v96_v11 = vsub.s32 1, %v91_v10  ;;  %v68_v20 = vld [vmem:[#allocation7 + $0x10] sm:$0xff]  ;;  %v71_v23 = vld [vmem:[#allocation7 + $0x28] sm:$0xff]  ;;  %v77_v30 = vld [vmem:[#allocation7 + $0x58] sm:$0xff]  ;;  %v92_v42 = vsub.s32 0, %v91_v10 }
  0x3e   :  { %v1562_v22 = vpack.c.bf16 %v68_v20, %v66_v19  ;;  %1141 = vmatprep.subr.bf16.mxu1 %v1557_v18  ;;  %1157 = vmatprep.subr.bf16.mxu0 %v1557_v18  ;;  %v1569_v25 = vpack.c.bf16 %v73_v24, %v71_v23  ;;  %v72_v27 = vld [vmem:[#allocation7 + $0x30] sm:$0xff]  ;;  %v75_v29 = vld [vmem:[#allocation7 + $0x48] sm:$0xff]  ;;  %v74_v31 = vld [vmem:[#allocation7 + $0x40] sm:$0xff] }
  0x3f   :  { %v1555_v13 = vrot.slane %v82_v12, %v96_v11  ;;  %v1571_v28 = vpack.c.bf16 %v72_v27, %v70_v26  ;;  %v1574_v32 = vpack.c.bf16 %v77_v30, %v75_v29  ;;  %v76_v33 = vld [vmem:[#allocation7 + $0x50] sm:$0xff]  ;;  %v79_v34 = vld [vmem:[#allocation7 + $0x68] sm:$0xff]  ;;  %v81_v35 = vld [vmem:[#allocation7 + $0x78] sm:$0xff]  ;;  %v1596_v43 = vrot.slane %v82_v12, %v92_v42 }
  0x40   :  { %1106 = vmatmul.mubr.msk.f32.vlgmr.msra.gmra.mrb[0].mxu0 %vm100_vm0, %v83_v8  ;;  %1143 = vmatpush1.bf16.msra.mxu1 %v1562_v22  ;;  %v1578_v36 = vpack.c.bf16 %v76_v33, %v74_v31  ;;  %v1582_v37 = vpack.c.bf16 %v81_v35, %v79_v34  ;;  %v78_v38 = vld [vmem:[#allocation7 + $0x60] sm:$0xff]  ;;  %v80_v39 = vld [vmem:[#allocation7 + $0x70] sm:$0xff]  ;;  %v84_v9 = vld [vmem:[#allocation3 + $0x8] sm:$0xff] }
  0x41   :  { %177 = vmatprep.mubr.f32.mxu0 %v1464_v1  ;;  %1159 = vmatpush1.bf16.msra.mxu0 %v1562_v22  ;;  %v1586_v40 = vpack.c.bf16 %v80_v39, %v78_v38 }
  0x42   :  { %1145 = vmatprep.subr.bf16.mxu1 %v1569_v25  ;;  %1161 = vmatprep.subr.bf16.mxu0 %v1569_v25 }
  0x44   :  { %1147 = vmatpush1.bf16.msra.mxu1 %v1571_v28  ;;  %1107 = vmatmul.mubr.msk.f32.gmra.mrb[2].mxu0 %vm100_vm0, %v84_v9 }
  0x45   :  { %1163 = vmatpush1.bf16.msra.mxu0 %v1571_v28  ;;  %1149 = vmatprep.subr.bf16.mxu1 %v1574_v32 }
  0x46   :  { %1165 = vmatprep.subr.bf16.mxu0 %v1574_v32  ;;  %393 = vmatprep.mubr.f32.mxu0 %v1464_v1 }
  0x48   :  { %1151 = vmatpush1.bf16.msra.mxu1 %v1578_v36 }
  0x49   :  { %1167 = vmatpush1.bf16.msra.mxu0 %v1578_v36  ;;  %1153 = vmatprep.subr.bf16.mxu1 %v1582_v37 }
  0x4a   :  { %1169 = vmatprep.subr.bf16.mxu0 %v1582_v37 }
  0x4c   :  { %1155 = vmatpush1.bf16.msra.mxu1 %v1586_v40 }
  0x4d   :  { %1171 = vmatpush1.bf16.msra.mxu0 %v1586_v40  ;;  %1173 = vmatprep.subr.bf16.mxu1 %v1557_v18 }
  0x4e   :  { %1189 = vmatprep.subr.bf16.mxu0 %v1557_v18 }
 0x113   :  { %v173_v14 = vpop.f32.mrb[0].mxu0 }
 0x114   :  { %v175_v17 = vpop.f32.mrb[1].mxu0  ;;  %v1599_v44 = vadd.f32 %v173_v14, %v1596_v43 }
 0x115   :  { %v1560_v21 = vadd.f32 %v175_v17, %v1555_v13 }
 0x116   :  { %v1108_v45 = vmul.f32 -1.442695, %v1599_v44  ;;  %v209_v59 = vrot.slane %v1599_v44, 2  ;;  %v322_v29 = vrot.slane %v1599_v44, 4 }
 0x117   :  { %1279 = vtanh.f32 %v1560_v21  ;;  %v1109_v47 = vmul.f32 -1.442695, %v1560_v21  ;;  %v210_v61 = vrot.slane %v1560_v21, 2  ;;  %v1622_v17 = vpop.f32.mrb[2].mxu0  ;;  %v323_v31 = vrot.slane %v1560_v21, 4 }
 0x118   :  { %1281 = vpow2.f32 %v1108_v45  ;;  %v1624_v19 = vpop.f32.mrb[3].mxu0 }
 0x119   :  { %1283 = vpow2.f32 %v1109_v47 }
 0x121   :  { %v1280_v41 = vpop.eup %1279 }
 0x122   :  { %200 = vrot.lane.b32.xlu0 %v1280_v41, %s1465_s3  ;;  %v1282_v46 = vpop.eup %1281 }
 0x123   :  { %v192_v48 = vadd.f32 1.0, %v1282_v46  ;;  %v1284_v49 = vpop.eup %1283 }
 0x124   :  { %v193_v51 = vadd.f32 1.0, %v1284_v49 }
 0x125   :  { %1285 = vrcp.f32 %v192_v48 }
 0x126   :  { %1287 = vrcp.f32 %v193_v51 }
 0x12f   :  { %v1286_v50 = vpop.eup %1285 }
 0x130   :  { %v1288_v56 = vpop.eup %1287 }
 0x194   :  { %v201_v52 = vpop.permute.xlu0 %200 }
 0x195   :  { %v203_v54 = vmul.f32 %v1286_v50, %v201_v52 }
 0x197   :  { %v204_v55 = vmul.f32 %v203_v54, %v185_v53 }
 0x199   :  { %302 = vrot.lane.b32.xlu1 %v204_v55, %s1465_s3  ;;  %1289 = vtanh.f32 %v204_v55 }
 0x1a3   :  { %v1290_v57 = vpop.eup %1289 }
 0x1a4   :  { %v206_v58 = vmul.f32 %v1290_v57, %v1288_v56 }
 0x1a6   :  { %1110 = vmatmul.mubr.msk.f32.vlgmr.msra.gmra.mrb[0].mxu1 %vm213_vm2, %v206_v58  ;;  %v430_v58 = vrot.slane %v1599_v44, 6 }
 0x1a7   :  { %1175 = vmatpush1.bf16.msra.mxu1 %v1562_v22  ;;  %501 = vmatprep.mubr.f32.mxu1 %v1464_v1 }
 0x1a8   :  { %1177 = vmatprep.subr.bf16.mxu1 %v1569_v25 }
 0x1ab   :  { %1179 = vmatpush1.bf16.msra.mxu1 %v1571_v28 }
 0x1ac   :  { %1181 = vmatprep.subr.bf16.mxu1 %v1574_v32 }
 0x1af   :  { %1183 = vmatpush1.bf16.msra.mxu1 %v1578_v36 }
 0x1b0   :  { %1185 = vmatprep.subr.bf16.mxu1 %v1582_v37 }
 0x1b3   :  { %1187 = vmatpush1.bf16.msra.mxu1 %v1586_v40 }
 0x1b4   :  { %1205 = vmatprep.subr.bf16.mxu1 %v1557_v18 }
 0x20b   :  { %v303_v10 = vpop.permute.xlu1 %302 }
 0x279   :  { %v283_v60 = vpop.f32.mrb[0].mxu1 }
 0x27a   :  { %v284_v62 = vadd.f32 %v283_v60, %v209_v59  ;;  %v285_v63 = vpop.f32.mrb[1].mxu1  ;;  %v431_v60 = vrot.slane %v1560_v21, 6 }
 0x27b   :  { %v286_v0 = vadd.f32 %v285_v63, %v210_v61 }
 0x27c   :  { %v1111_v3 = vmul.f32 -1.442695, %v284_v62 }
 0x27d   :  { %1291 = vtanh.f32 %v286_v0  ;;  %v1112_v16 = vmul.f32 -1.442695, %v286_v0 }
 0x27e   :  { %1293 = vpow2.f32 %v1111_v3 }
 0x287   :  { %v1292_v2 = vpop.eup %1291 }
 0x288   :  { %307 = vrot.lane.b32.xlu0 %v1292_v2, %s1465_s3  ;;  %v1294_v4 = vpop.eup %1293 }
 0x289   :  { %v294_v5 = vadd.f32 1.0, %v1294_v4 }
 0x28b   :  { %1295 = vrcp.f32 %v294_v5 }
 0x295   :  { %v1296_v6 = vpop.eup %1295 }
 0x296   :  { %v305_v11 = vmul.f32 %v1296_v6, %v303_v10 }
 0x2fa   :  { %v308_v7 = vpop.permute.xlu0 %307 }
 0x2fb   :  { %v310_v8 = vmul.f32 %v1296_v6, %v308_v7 }
 0x2fd   :  { %312 = vrot.lane.b32.xlu1 %v310_v8, %s1465_s3 }
 0x36f   :  { %v313_v12 = vpop.permute.xlu1 %312 }
 0x370   :  { %v315_v14 = vadd.f32 %v313_v12, %v305_v11 }
 0x372   :  { %1297 = vtanh.f32 %v315_v14 }
 0x373   :  { %1299 = vpow2.f32 %v1112_v16 }
 0x37c   :  { %v1298_v15 = vpop.eup %1297 }
 0x37d   :  { %318 = vrot.lane.b32.xlu0 %v1298_v15, %s1465_s3  ;;  %v1300_v20 = vpop.eup %1299 }
 0x37e   :  { %v295_v23 = vadd.f32 1.0, %v1300_v20  ;;  %v1668_v20 = vadd.f32 %v1624_v19, %v1555_v13 }
 0x380   :  { %1301 = vrcp.f32 %v295_v23 }
 0x38a   :  { %v1302_v24 = vpop.eup %1301 }
 0x3ef   :  { %v319_v26 = vpop.permute.xlu0 %318 }
 0x3f0   :  { %v321_v27 = vmul.f32 %v1302_v24, %v319_v26 }
 0x3f2   :  { %1113 = vmatmul.mubr.msk.f32.vlgmr.msra.gmra.mrb[4].mxu0 %vm213_vm2, %v321_v27 }
 0x3f3   :  { %1191 = vmatpush1.bf16.msra.mxu0 %v1562_v22  ;;  %605 = vmatprep.mubr.f32.mxu0 %v1464_v1 }
 0x3f4   :  { %1193 = vmatprep.subr.bf16.mxu0 %v1569_v25 }
 0x3f7   :  { %1195 = vmatpush1.bf16.msra.mxu0 %v1571_v28 }
 0x3f8   :  { %1197 = vmatprep.subr.bf16.mxu0 %v1574_v32 }
 0x3fb   :  { %1199 = vmatpush1.bf16.msra.mxu0 %v1578_v36 }
 0x3fc   :  { %1201 = vmatprep.subr.bf16.mxu0 %v1582_v37 }
 0x3ff   :  { %1203 = vmatpush1.bf16.msra.mxu0 %v1586_v40 }
 0x400   :  { %1221 = vmatprep.subr.bf16.mxu0 %v1557_v18 }
 0x4c5   :  { %v395_v30 = vpop.f32.mrb[4].mxu0 }
 0x4c6   :  { %v396_v33 = vadd.f32 %v395_v30, %v322_v29  ;;  %v397_v34 = vpop.f32.mrb[5].mxu0  ;;  %v1674_v29 = vadd.f32 %v1622_v17, %v1596_v43 }
 0x4c7   :  { %v398_v35 = vadd.f32 %v397_v34, %v323_v31 }
 0x4c8   :  { %v1114_v39 = vmul.f32 -1.442695, %v396_v33 }
 0x4c9   :  { %1303 = vtanh.f32 %v398_v35  ;;  %v1115_v52 = vmul.f32 -1.442695, %v398_v35 }
 0x4ca   :  { %1305 = vpow2.f32 %v1114_v39 }
 0x4d3   :  { %v1304_v38 = vpop.eup %1303 }
 0x4d4   :  { %415 = vrot.lane.b32.xlu1 %v1304_v38, %s1465_s3  ;;  %v1306_v41 = vpop.eup %1305 }
 0x4d5   :  { %v406_v42 = vadd.f32 1.0, %v1306_v41 }
 0x4d7   :  { %1307 = vrcp.f32 %v406_v42 }
 0x4e1   :  { %v1308_v45 = vpop.eup %1307 }
 0x4e2   :  { %v413_v48 = vmul.f32 %v1308_v45, %v315_v14 }
 0x546   :  { %v416_v46 = vpop.permute.xlu1 %415 }
 0x547   :  { %v418_v47 = vmul.f32 %v1308_v45, %v416_v46 }
 0x549   :  { %420 = vrot.lane.b32.xlu0 %v418_v47, %s1465_s3 }
 0x5bb   :  { %v421_v49 = vpop.permute.xlu0 %420 }
 0x5bc   :  { %v423_v50 = vadd.f32 %v421_v49, %v413_v48 }
 0x5be   :  { %1309 = vtanh.f32 %v423_v50 }
 0x5bf   :  { %1311 = vpow2.f32 %v1115_v52 }
 0x5c8   :  { %v1310_v51 = vpop.eup %1309 }
 0x5c9   :  { %426 = vrot.lane.b32.xlu1 %v1310_v51, %s1465_s3  ;;  %v1312_v53 = vpop.eup %1311  ;;  %v645_v51 = vrot.slane %v1668_v20, 2 }
 0x5ca   :  { %v407_v54 = vadd.f32 1.0, %v1312_v53 }
 0x5cc   :  { %1313 = vrcp.f32 %v407_v54 }
 0x5d6   :  { %v1314_v55 = vpop.eup %1313 }
 0x63b   :  { %v427_v56 = vpop.permute.xlu1 %426 }
 0x63c   :  { %v429_v57 = vmul.f32 %v1314_v55, %v427_v56  ;;  %v644_v55 = vrot.slane %v1674_v29, 2 }
 0x63e   :  { %1116 = vmatmul.mubr.msk.f32.vlgmr.msra.gmra.mrb[2].mxu1 %vm213_vm2, %v429_v57 }
 0x63f   :  { %1207 = vmatpush1.bf16.msra.mxu1 %v1562_v22  ;;  %715 = vmatprep.mubr.f32.mxu1 %v1464_v1 }
 0x640   :  { %1209 = vmatprep.subr.bf16.mxu1 %v1569_v25 }
 0x643   :  { %1211 = vmatpush1.bf16.msra.mxu1 %v1571_v28 }
 0x644   :  { %1213 = vmatprep.subr.bf16.mxu1 %v1574_v32 }
 0x647   :  { %1215 = vmatpush1.bf16.msra.mxu1 %v1578_v36 }
 0x648   :  { %1217 = vmatprep.subr.bf16.mxu1 %v1582_v37 }
 0x64b   :  { %1219 = vmatpush1.bf16.msra.mxu1 %v1586_v40 }
 0x64c   :  { %1237 = vmatprep.subr.bf16.mxu1 %v1557_v18 }
 0x711   :  { %v503_v59 = vpop.f32.mrb[2].mxu1 }
 0x712   :  { %v504_v61 = vadd.f32 %v503_v59, %v430_v58  ;;  %v505_v62 = vpop.f32.mrb[3].mxu1 }
 0x713   :  { %v506_v63 = vadd.f32 %v505_v62, %v431_v60 }
 0x714   :  { %v1117_v2 = vmul.f32 -1.442695, %v504_v61 }
 0x715   :  { %1315 = vtanh.f32 %v506_v63  ;;  %v1118_v10 = vmul.f32 -1.442695, %v506_v63 }
 0x716   :  { %1317 = vpow2.f32 %v1117_v2 }
 0x71f   :  { %v1316_v0 = vpop.eup %1315 }
 0x720   :  { %523 = vrot.lane.b32.xlu0 %v1316_v0, %s1465_s3  ;;  %v1318_v3 = vpop.eup %1317 }
 0x721   :  { %v514_v4 = vadd.f32 1.0, %v1318_v3 }
 0x723   :  { %1319 = vrcp.f32 %v514_v4 }
 0x72d   :  { %v1320_v5 = vpop.eup %1319 }
 0x72e   :  { %v521_v44 = vmul.f32 %v1320_v5, %v423_v50 }
 0x792   :  { %v524_v6 = vpop.permute.xlu0 %523 }
 0x793   :  { %v526_v7 = vmul.f32 %v1320_v5, %v524_v6 }
 0x795   :  { %528 = vrot.lane.b32.xlu1 %v526_v7, %s1465_s3 }
 0x807   :  { %v529_v8 = vpop.permute.xlu1 %528 }
 0x808   :  { %v531_v21 = vadd.f32 %v529_v8, %v521_v44 }
 0x80a   :  { %1321 = vtanh.f32 %v531_v21 }
 0x80b   :  { %1323 = vpow2.f32 %v1118_v10 }
 0x814   :  { %v1322_v9 = vpop.eup %1321 }
 0x815   :  { %534 = vrot.lane.b32.xlu0 %v1322_v9, %s1465_s3  ;;  %v1324_v11 = vpop.eup %1323  ;;  %v753_v9 = vrot.slane %v1668_v20, 4 }
 0x816   :  { %v515_v12 = vadd.f32 1.0, %v1324_v11 }
 0x818   :  { %1325 = vrcp.f32 %v515_v12 }
 0x822   :  { %v1326_v14 = vpop.eup %1325 }
 0x887   :  { %v535_v15 = vpop.permute.xlu0 %534 }
 0x888   :  { %v537_v16 = vmul.f32 %v1326_v14, %v535_v15 }
 0x88a   :  { %1119 = vmatmul.mubr.msk.f32.vlgmr.msra.gmra.mrb[6].mxu0 %vm213_vm2, %v537_v16 }
 0x88b   :  { %1223 = vmatpush1.bf16.msra.mxu0 %v1562_v22  ;;  %823 = vmatprep.mubr.f32.mxu0 %v1464_v1 }
 0x88c   :  { %1225 = vmatprep.subr.bf16.mxu0 %v1569_v25 }
 0x88f   :  { %1227 = vmatpush1.bf16.msra.mxu0 %v1571_v28 }
 0x890   :  { %1229 = vmatprep.subr.bf16.mxu0 %v1574_v32 }
 0x893   :  { %1231 = vmatpush1.bf16.msra.mxu0 %v1578_v36 }
 0x894   :  { %1233 = vmatprep.subr.bf16.mxu0 %v1582_v37 }
 0x897   :  { %1235 = vmatpush1.bf16.msra.mxu0 %v1586_v40 }
 0x898   :  { %1253 = vmatprep.subr.bf16.mxu0 %v1557_v18 }
 0x95d   :  { %v607_v23 = vpop.f32.mrb[6].mxu0 }
 0x95e   :  { %v609_v24 = vpop.f32.mrb[7].mxu0  ;;  %v608_v30 = vadd.f32 %v607_v23, %v1674_v29 }
 0x95f   :  { %v610_v26 = vadd.f32 %v609_v24, %v1668_v20 }
 0x960   :  { %v1120_v31 = vmul.f32 -1.442695, %v608_v30 }
 0x961   :  { %1327 = vtanh.f32 %v610_v26  ;;  %v1121_v17 = vmul.f32 -1.442695, %v610_v26 }
 0x962   :  { %1329 = vpow2.f32 %v1120_v31 }
 0x96b   :  { %v1328_v27 = vpop.eup %1327 }
 0x96c   :  { %627 = vrot.lane.b32.xlu1 %v1328_v27, %s1465_s3  ;;  %v1330_v18 = vpop.eup %1329 }
 0x96d   :  { %v618_v33 = vadd.f32 1.0, %v1330_v18 }
 0x96f   :  { %1331 = vrcp.f32 %v618_v33 }
 0x979   :  { %v1332_v19 = vpop.eup %1331 }
 0x97a   :  { %v625_v38 = vmul.f32 %v1332_v19, %v531_v21 }
 0x9de   :  { %v628_v34 = vpop.permute.xlu1 %627 }
 0x9df   :  { %v630_v35 = vmul.f32 %v1332_v19, %v628_v34  ;;  %v861_v19 = vrot.slane %v1668_v20, 6 }
 0x9e1   :  { %632 = vrot.lane.b32.xlu0 %v630_v35, %s1465_s3 }
 0xa53   :  { %v633_v39 = vpop.permute.xlu0 %632 }
 0xa54   :  { %v635_v41 = vadd.f32 %v633_v39, %v625_v38  ;;  %v860_v39 = vrot.slane %v1674_v29, 6 }
 0xa56   :  { %1333 = vtanh.f32 %v635_v41 }
 0xa57   :  { %1335 = vpow2.f32 %v1121_v17 }
 0xa60   :  { %v1334_v42 = vpop.eup %1333 }
 0xa61   :  { %638 = vrot.lane.b32.xlu1 %v1334_v42, %s1465_s3  ;;  %v1336_v45 = vpop.eup %1335 }
 0xa62   :  { %v619_v46 = vadd.f32 1.0, %v1336_v45 }
 0xa64   :  { %1337 = vrcp.f32 %v619_v46 }
 0xa6e   :  { %v1338_v47 = vpop.eup %1337 }
 0xad3   :  { %v639_v48 = vpop.permute.xlu1 %638 }
 0xad4   :  { %v641_v49 = vmul.f32 %v1338_v47, %v639_v48 }
 0xad6   :  { %1122 = vmatmul.mubr.msk.f32.vlgmr.msra.gmra.mrb[4].mxu1 %vm213_vm2, %v641_v49 }
 0xad7   :  { %1239 = vmatpush1.bf16.msra.mxu1 %v1562_v22  ;;  %931 = vmatprep.mubr.f32.mxu1 %v1464_v1 }
 0xad8   :  { %1241 = vmatprep.subr.bf16.mxu1 %v1569_v25 }
 0xadb   :  { %1243 = vmatpush1.bf16.msra.mxu1 %v1571_v28 }
 0xadc   :  { %1245 = vmatprep.subr.bf16.mxu1 %v1574_v32 }
 0xadf   :  { %1247 = vmatpush1.bf16.msra.mxu1 %v1578_v36 }
 0xae0   :  { %1249 = vmatprep.subr.bf16.mxu1 %v1582_v37 }
 0xae3   :  { %1251 = vmatpush1.bf16.msra.mxu1 %v1586_v40 }
 0xba9   :  { %v717_v50 = vpop.f32.mrb[4].mxu1 }
 0xbaa   :  { %v719_v52 = vpop.f32.mrb[5].mxu1  ;;  %v718_v56 = vadd.f32 %v717_v50, %v644_v55 }
 0xbab   :  { %v720_v53 = vadd.f32 %v719_v52, %v645_v51 }
 0xbac   :  { %v1123_v57 = vmul.f32 -1.442695, %v718_v56 }
 0xbad   :  { %1339 = vtanh.f32 %v720_v53  ;;  %v1124_v4 = vmul.f32 -1.442695, %v720_v53 }
 0xbae   :  { %1341 = vpow2.f32 %v1123_v57 }
 0xbb7   :  { %v1340_v54 = vpop.eup %1339 }
 0xbb8   :  { %737 = vrot.lane.b32.xlu0 %v1340_v54, %s1465_s3  ;;  %v1342_v58 = vpop.eup %1341 }
 0xbb9   :  { %v728_v59 = vadd.f32 1.0, %v1342_v58 }
 0xbbb   :  { %1343 = vrcp.f32 %v728_v59 }
 0xbc5   :  { %v1344_v60 = vpop.eup %1343 }
 0xbc6   :  { %v735_v63 = vmul.f32 %v1344_v60, %v635_v41 }
 0xc2a   :  { %v738_v61 = vpop.permute.xlu0 %737 }
 0xc2b   :  { %v740_v62 = vmul.f32 %v1344_v60, %v738_v61 }
 0xc2d   :  { %742 = vrot.lane.b32.xlu1 %v740_v62, %s1465_s3 }
 0xc9f   :  { %v743_v0 = vpop.permute.xlu1 %742 }
 0xca0   :  { %v745_v2 = vadd.f32 %v743_v0, %v735_v63 }
 0xca2   :  { %1345 = vtanh.f32 %v745_v2 }
 0xca3   :  { %1347 = vpow2.f32 %v1124_v4 }
 0xcac   :  { %v1346_v3 = vpop.eup %1345 }
 0xcad   :  { %748 = vrot.lane.b32.xlu0 %v1346_v3, %s1465_s3  ;;  %v1348_v5 = vpop.eup %1347 }
 0xcae   :  { %v729_v6 = vadd.f32 1.0, %v1348_v5 }
 0xcb0   :  { %1349 = vrcp.f32 %v729_v6 }
 0xcba   :  { %v1350_v7 = vpop.eup %1349 }
 0xd1f   :  { %v749_v44 = vpop.permute.xlu0 %748 }
 0xd20   :  { %v751_v8 = vmul.f32 %v1350_v7, %v749_v44 }
 0xd22   :  { %1125 = vmatmul.mubr.msk.f32.vlgmr.msra.gmra.mrb[8].mxu0 %vm213_vm2, %v751_v8 }
 0xd23   :  { %1255 = vmatpush1.bf16.msra.mxu0 %v1562_v22  ;;  %1035 = vmatprep.mubr.f32.mxu0 %v1464_v1  ;;  %v752_v1 = vrot.slane %v1674_v29, 4 }
 0xd24   :  { %1257 = vmatprep.subr.bf16.mxu0 %v1569_v25 }
 0xd27   :  { %1259 = vmatpush1.bf16.msra.mxu0 %v1571_v28 }
 0xd28   :  { %1261 = vmatprep.subr.bf16.mxu0 %v1574_v32 }
 0xd2b   :  { %1263 = vmatpush1.bf16.msra.mxu0 %v1578_v36 }
 0xd2c   :  { %1265 = vmatprep.subr.bf16.mxu0 %v1582_v37 }
 0xd2f   :  { %1267 = vmatpush1.bf16.msra.mxu0 %v1586_v40 }
 0xdf5   :  { %v825_v21 = vpop.f32.mrb[8].mxu0 }
 0xdf6   :  { %v827_v10 = vpop.f32.mrb[9].mxu0  ;;  %v826_v25 = vadd.f32 %v825_v21, %v752_v1 }
 0xdf7   :  { %v828_v11 = vadd.f32 %v827_v10, %v753_v9 }
 0xdf8   :  { %v1126_v28 = vmul.f32 -1.442695, %v826_v25 }
 0xdf9   :  { %1351 = vtanh.f32 %v828_v11  ;;  %v1127_v24 = vmul.f32 -1.442695, %v828_v11 }
 0xdfa   :  { %1353 = vpow2.f32 %v1126_v28 }
 0xe03   :  { %v1352_v22 = vpop.eup %1351 }
 0xe04   :  { %845 = vrot.lane.b32.xlu1 %v1352_v22, %s1465_s3  ;;  %v1354_v32 = vpop.eup %1353 }
 0xe05   :  { %v836_v36 = vadd.f32 1.0, %v1354_v32  ;;  %v1135_v32 = vld [vmem:[#allocation2] ss:$0 sm:$0xff] }
 0xe07   :  { %1355 = vrcp.f32 %v836_v36 }
 0xe11   :  { %v1356_v37 = vpop.eup %1355 }
 0xe12   :  { %v843_v14 = vmul.f32 %v1356_v37, %v745_v2 }
 0xe76   :  { %v846_v12 = vpop.permute.xlu1 %845 }
 0xe77   :  { %v848_v40 = vmul.f32 %v1356_v37, %v846_v12 }
 0xe79   :  { %850 = vrot.lane.b32.xlu0 %v848_v40, %s1465_s3 }
 0xeeb   :  { %v851_v15 = vpop.permute.xlu0 %850 }
 0xeec   :  { %v853_v16 = vadd.f32 %v851_v15, %v843_v14 }
 0xeee   :  { %1357 = vtanh.f32 %v853_v16 }
 0xeef   :  { %1359 = vpow2.f32 %v1127_v24 }
 0xef8   :  { %v1358_v23 = vpop.eup %1357 }
 0xef9   :  { %856 = vrot.lane.b32.xlu1 %v1358_v23, %s1465_s3  ;;  %v1360_v26 = vpop.eup %1359 }
 0xefa   :  { %v837_v27 = vadd.f32 1.0, %v1360_v26 }
 0xefc   :  { %1361 = vrcp.f32 %v837_v27 }
 0xf06   :  { %v1362_v30 = vpop.eup %1361 }
 0xf6b   :  { %v857_v31 = vpop.permute.xlu1 %856 }
 0xf6c   :  { %v859_v18 = vmul.f32 %v1362_v30, %v857_v31 }
 0xf6e   :  { %1128 = vmatmul.mubr.msk.f32.vlgmr.msra.gmra.mrb[6].mxu1 %vm213_vm2, %v859_v18 }
0x1041   :  { %v933_v33 = vpop.f32.mrb[6].mxu1 }
0x1042   :  { %v935_v34 = vpop.f32.mrb[7].mxu1  ;;  %v934_v41 = vadd.f32 %v933_v33, %v860_v39 }
0x1043   :  { %v936_v35 = vadd.f32 %v935_v34, %v861_v19 }
0x1044   :  { %v1129_v42 = vmul.f32 -1.442695, %v934_v41 }
0x1045   :  { %1363 = vtanh.f32 %v936_v35  ;;  %v1130_v52 = vmul.f32 -1.442695, %v936_v35 }
0x1046   :  { %1365 = vpow2.f32 %v1129_v42 }
0x104f   :  { %v1364_v38 = vpop.eup %1363 }
0x1050   :  { %953 = vrot.lane.b32.xlu0 %v1364_v38, %s1465_s3  ;;  %v1366_v17 = vpop.eup %1365 }
0x1051   :  { %v944_v45 = vadd.f32 1.0, %v1366_v17 }
0x1053   :  { %1367 = vrcp.f32 %v944_v45 }
0x105d   :  { %v1368_v46 = vpop.eup %1367 }
0x105e   :  { %v951_v20 = vmul.f32 %v1368_v46, %v853_v16 }
0x10c2   :  { %v954_v47 = vpop.permute.xlu0 %953 }
0x10c3   :  { %v956_v48 = vmul.f32 %v1368_v46, %v954_v47 }
0x10c5   :  { %958 = vrot.lane.b32.xlu1 %v956_v48, %s1465_s3 }
0x1137   :  { %v959_v49 = vpop.permute.xlu1 %958 }
0x1138   :  { %v961_v50 = vadd.f32 %v959_v49, %v951_v20 }
0x113a   :  { %1369 = vtanh.f32 %v961_v50 }
0x113b   :  { %1371 = vpow2.f32 %v1130_v52 }
0x1144   :  { %v1370_v51 = vpop.eup %1369 }
0x1145   :  { %964 = vrot.lane.b32.xlu0 %v1370_v51, %s1465_s3  ;;  %v1372_v29 = vpop.eup %1371 }
0x1146   :  { %v945_v53 = vadd.f32 1.0, %v1372_v29 }
0x1148   :  { %1373 = vrcp.f32 %v945_v53 }
0x1152   :  { %v1374_v54 = vpop.eup %1373 }
0x11b7   :  { %v965_v55 = vpop.permute.xlu0 %964 }
0x11b8   :  { %v967_v56 = vmul.f32 %v1374_v54, %v965_v55 }
0x11ba   :  { %1131 = vmatmul.mubr.msk.f32.vlgmr.msra.gmra.mrb[10].mxu0 %vm213_vm2, %v967_v56 }
0x128d   :  { %v1037_v57 = vpop.f32.mrb[10].mxu0 }
0x128e   :  { %v1039_v58 = vpop.f32.mrb[11].mxu0  ;;  %v1038_v61 = vadd.f32 %v1037_v57, %v1596_v43 }
0x128f   :  { %v1040_v59 = vadd.f32 %v1039_v58, %v1555_v13  ;;  %v1134_v13 = vld [vmem:[%s1729_s4] ss:$0 sm:$0xff]  ;;  %s1467_s4 = smov 96  }
0x1290   :  { %v1132_v62 = vmul.f32 -1.442695, %v1038_v61 }
0x1291   :  { %1375 = vtanh.f32 %v1040_v59  ;;  %v1133_v44 = vmul.f32 -1.442695, %v1040_v59 }
0x1292   :  { %1377 = vpow2.f32 %v1132_v62 }
0x129b   :  { %v1376_v60 = vpop.eup %1375 }
0x129c   :  { %1057 = vrot.lane.b32.xlu1 %v1376_v60, %s1465_s3  ;;  %v1378_v63 = vpop.eup %1377 }
0x129d   :  { %v1048_v0 = vadd.f32 1.0, %v1378_v63 }
0x129f   :  { %1379 = vrcp.f32 %v1048_v0 }
0x12a9   :  { %v1380_v2 = vpop.eup %1379 }
0x12aa   :  { %v1055_v5 = vmul.f32 %v1380_v2, %v961_v50 }
0x130e   :  { %v1058_v3 = vpop.permute.xlu1 %1057 }
0x130f   :  { %v1060_v4 = vmul.f32 %v1380_v2, %v1058_v3 }
0x1311   :  { %1062 = vrot.lane.b32.xlu0 %v1060_v4, %s1465_s3 }
0x1315   :  { %1078 = vrot.lane.b32.xlu0 %v1134_v13, %s1466_s14 }
0x1383   :  { %v1063_v6 = vpop.permute.xlu0 %1062 }
0x1384   :  { %v1065_v7 = vadd.f32 %v1063_v6, %v1055_v5 }
0x1386   :  { %1381 = vtanh.f32 %v1065_v7 }
0x1387   :  { %1383 = vpow2.f32 %v1133_v44  ;;  %v1079_v11 = vpop.permute.xlu0 %1078 }
0x1390   :  { %v1382_v43 = vpop.eup %1381 }
0x1391   :  { %1068 = vrot.lane.b32.xlu1 %v1382_v43, %s1465_s3  ;;  %v1384_v8 = vpop.eup %1383 }
0x1392   :  { %v1049_v21 = vadd.f32 1.0, %v1384_v8 }
0x1394   :  { %1385 = vrcp.f32 %v1049_v21 }
0x139e   :  { %v1386_v9 = vpop.eup %1385 }
0x1403   :  { %v1069_v10 = vpop.permute.xlu1 %1068 }
0x1404   :  { %v1071_v22 = vmul.f32 %v1386_v9, %v1069_v10 }
0x1406   :  { %v1081_v1 = vmul.f32 %v1079_v11, %v1071_v22 }
0x1408   :  { %1083 = vrot.lane.b32.xlu1 %v1081_v1, %s1467_s4 }
0x147a   :  { %v1084_v25 = vpop.permute.xlu1 %1083 }
0x147b   :  { %v1087_v28 = vsel %vm1086_vm3, %v1084_v25, 0.0 }
0x147c   :  { %1088 = vadd.xlane.f32.xlu0 %v1087_v28 }
0x1509   :  { %v1089_v36 = vpop.xlane.xlu0 %1088 }
0x150a   :  { %v1097_v37 = vadd.f32 %v1135_v32, %v1089_v36 }
0x150c   :  { %1099 = vst.msk [vmem:[%s1731_s6] sm:$0x3] %vm1098_vm4, %v1097_v37 }
0x150d   :  { %1104 = vsyncpa [#allocation4], 1 }
0x150e   :  { %1105 = vsyncpa [#allocation6], 1 }

</bundles_post_ra>
